<compile_context>
chip_gen: v6e
topology: v6e:2x2x1
jax: 0.10.0
libtpu: 0.0.40
codegen_flags: <defaults>
</compile_context>

<pallas_src>
import functools

import jax
import jax.numpy as jnp
from jax.experimental import pallas as pl
from jax.experimental.pallas import tpu as pltpu


def _round_up(x, m):
    return ((x + m - 1) // m) * m


def _pick_tile_n(n, tile_n, *, min_steps=8, align=512, cap=4096):
    """Padding-aware, megacore-aware tile size.

    - `cap` keeps the lane-padded double buffers comfortably under every
      generation's default scoped-VMEM limit (v5e 16 MiB, v6e/v7x 32 MiB).
    - shrinking until the ("parallel",) grid has >= min_steps steps lets v7x
      shard across both TensorCores and gives each core pipelining slack;
      costs nothing on v5e/v6e.
    - `align`=512 is a multiple of both 8 (sublane tiling, (N,G) path) and
      128 (lane tiling, (G,N)/fused paths).
    """
    tile_n = min(int(tile_n), cap)
    tile_n = min(tile_n, max(align, _round_up(pl.cdiv(n, min_steps), align)))
    tile_n = min(tile_n, _round_up(max(n, 1), align))
    return max(align, tile_n)


def _offsets_row(num_gaussians, start, delta):
    # Offsets generated in-kernel from an iota (closed-over Python constants)
    # -> no extra streaming input, no sub-(8,128) block DMA per step.
    g_idx = jax.lax.broadcasted_iota(jnp.int32, (1, num_gaussians), 1)
    return start + delta * g_idx.astype(jnp.float32)        # (1, G)


def _smearing_kernel_ng(dist_ref, out_ref, *, coeff, start, delta, num_gaussians):
    # dist_ref: (TN, 1) tile of distances; out_ref: (TN, G) module layout.
    d = dist_ref[...]                                        # (TN, 1) f32
    diff = d - _offsets_row(num_gaussians, start, delta)     # (TN, G)
    # coeff < 0 => result in (0, 1]; padded boundary rows stay finite and are
    # masked on writeback.
    out_ref[...] = jnp.exp(coeff * diff * diff).astype(out_ref.dtype)


def _smearing_kernel_gn(dist_ref, out_ref, *, coeff, start, delta, num_gaussians):
    # Lane-dense orientation: dist_ref (1, TN); out_ref (G, TN).
    d = dist_ref[...]                                        # (1, TN) f32
    g_idx = jax.lax.broadcasted_iota(jnp.int32, (num_gaussians, 1), 0)
    off = start + delta * g_idx.astype(jnp.float32)          # (G, 1)
    diff = d - off                                           # (G, TN)
    out_ref[...] = jnp.exp(coeff * diff * diff).astype(out_ref.dtype)


def _smearing_linear_kernel(dist_ref, w_ref, b_ref, out_ref, *,
                            coeff, start, delta, num_gaussians):
    # Fused: exp features stay in VMEM, immediately consumed by the MXU.
    d = dist_ref[...]                                        # (TN, 1) f32
    diff = d - _offsets_row(num_gaussians, start, delta)     # (TN, G)
    feats = jnp.exp(coeff * diff * diff)                     # (TN, G) f32, VMEM only
    acc = jnp.dot(feats, w_ref[...],
                  preferred_element_type=jnp.float32,
                  precision=jax.lax.Precision.HIGHEST)       # (TN, F) on MXU
    out_ref[...] = (acc + b_ref[...]).astype(out_ref.dtype)  # (1, F) bias broadcast


def gaussian_smearing(dist, *, start=0.0, stop=5.0, num_gaussians=50,
                      tile_n=4096, out_dtype=jnp.float32):
    """Matches GaussianSmearing.forward: dist (N,) -> (N, num_gaussians).

    Layout note: G=50 < 128 lanes, so output stores are masked and the
    (tile_n, 1) input tile is lane-padded in VMEM. When the consumer allows
    it, prefer `gaussian_smearing_lane_dense` (transposed, full-lane stores)
    or `gaussian_smearing_linear` (fused with the downstream Linear).
    out_dtype=jnp.bfloat16 halves the dominant HBM write.
    """
    if num_gaussians < 2:
        raise ValueError("num_gaussians must be >= 2 (delta would be 0).")
    n = dist.shape[0]
    delta = (stop - start) / (num_gaussians - 1)
    coeff = -0.5 / (delta ** 2)

    tile_n = _pick_tile_n(n, tile_n, cap=4096)
    dist2d = dist.astype(jnp.float32).reshape(n, 1)
    kernel = functools.partial(
        _smearing_kernel_ng, coeff=float(coeff), start=float(start),
        delta=float(delta), num_gaussians=num_gaussians)
    out_bytes = n * num_gaussians * jnp.dtype(out_dtype).itemsize

    return pl.pallas_call(
        kernel,
        out_shape=jax.ShapeDtypeStruct((n, num_gaussians), out_dtype),
        grid_spec=pltpu.PrefetchScalarGridSpec(
            num_scalar_prefetch=0,
            grid=(pl.cdiv(n, tile_n),),
            in_specs=[pl.BlockSpec((tile_n, 1), lambda i: (i, 0))],
            out_specs=pl.BlockSpec((tile_n, num_gaussians), lambda i: (i, 0)),
        ),
        compiler_params=pltpu.CompilerParams(
            dimension_semantics=("parallel",)),
        cost_estimate=pl.CostEstimate(
            flops=3 * n * num_gaussians,
            transcendentals=n * num_gaussians,
            bytes_accessed=4 * n + out_bytes),
    )(dist2d)


def gaussian_smearing_lane_dense(dist, *, start=0.0, stop=5.0, num_gaussians=50,
                                 tile_n=8192, out_dtype=jnp.float32):
    """Lane-dense variant: returns (num_gaussians, N) == forward(dist).T.

    Preferred when the downstream consumer accepts the transposed layout:
    the distance input is a contiguous (1, tile_n) slab and all stores are
    full-width 128-lane vector ops instead of 50-lane masked partial stores.
    """
    if num_gaussians < 2:
        raise ValueError("num_gaussians must be >= 2 (delta would be 0).")
    n = dist.shape[0]
    delta = (stop - start) / (num_gaussians - 1)
    coeff = -0.5 / (delta ** 2)

    tile_n = _pick_tile_n(n, tile_n, cap=8192)
    dist2d = dist.astype(jnp.float32).reshape(1, n)
    kernel = functools.partial(
        _smearing_kernel_gn, coeff=float(coeff), start=float(start),
        delta=float(delta), num_gaussians=num_gaussians)
    out_bytes = n * num_gaussians * jnp.dtype(out_dtype).itemsize

    return pl.pallas_call(
        kernel,
        out_shape=jax.ShapeDtypeStruct((num_gaussians, n), out_dtype),
        grid_spec=pltpu.PrefetchScalarGridSpec(
            num_scalar_prefetch=0,
            grid=(pl.cdiv(n, tile_n),),
            in_specs=[pl.BlockSpec((1, tile_n), lambda i: (0, i))],
            out_specs=pl.BlockSpec((num_gaussians, tile_n), lambda i: (0, i)),
        ),
        compiler_params=pltpu.CompilerParams(
            dimension_semantics=("parallel",)),
        cost_estimate=pl.CostEstimate(
            flops=3 * n * num_gaussians,
            transcendentals=n * num_gaussians,
            bytes_accessed=4 * n + out_bytes),
    )(dist2d)


def gaussian_smearing_linear(dist, weight, bias=None, *, start=0.0, stop=5.0,
                             num_gaussians=50, tile_n=4096,
                             out_dtype=jnp.float32):
    """Fused GaussianSmearing + Linear(num_gaussians -> F).

    dist:   (N,)
    weight: (num_gaussians, F)  -- i.e. torch `Linear.weight.T`
    bias:   (F,) or None
    Returns (N, F). The (N, num_gaussians) feature expansion never leaves
    VMEM; the tiny (50, F) weight lives in VMEM with a constant index_map
    and the otherwise-idle MXU does the contraction.
    """
    if num_gaussians < 2:
        raise ValueError("num_gaussians must be >= 2 (delta would be 0).")
    n = dist.shape[0]
    g, f = weight.shape
    if g != num_gaussians:
        raise ValueError("weight must have shape (num_gaussians, F).")
    delta = (stop - start) / (num_gaussians - 1)
    coeff = -0.5 / (delta ** 2)

    tile_n = _pick_tile_n(n, tile_n, cap=4096)
    dist2d = dist.astype(jnp.float32).reshape(n, 1)
    w = weight.astype(jnp.float32)
    b = (jnp.zeros((f,), jnp.float32) if bias is None
         else bias.astype(jnp.float32)).reshape(1, f)
    kernel = functools.partial(
        _smearing_linear_kernel, coeff=float(coeff), start=float(start),
        delta=float(delta), num_gaussians=num_gaussians)
    out_bytes = n * f * jnp.dtype(out_dtype).itemsize

    return pl.pallas_call(
        kernel,
        out_shape=jax.ShapeDtypeStruct((n, f), out_dtype),
        grid_spec=pltpu.PrefetchScalarGridSpec(
            num_scalar_prefetch=0,
            grid=(pl.cdiv(n, tile_n),),
            in_specs=[pl.BlockSpec((tile_n, 1), lambda i: (i, 0)),
                      pl.BlockSpec((num_gaussians, f), lambda i: (0, 0)),
                      pl.BlockSpec((1, f), lambda i: (0, 0))],
            out_specs=pl.BlockSpec((tile_n, f), lambda i: (i, 0)),
        ),
        compiler_params=pltpu.CompilerParams(
            dimension_semantics=("parallel",)),
        cost_estimate=pl.CostEstimate(
            flops=3 * n * num_gaussians + 2 * n * num_gaussians * f,
            transcendentals=n * num_gaussians,
            bytes_accessed=4 * n + 4 * num_gaussians * f + 4 * f + out_bytes),
    )(dist2d, w, b)


if __name__ == "__main__":
    # Small deterministic input: 2500 edge distances in [0, 5). With the
    # adaptive tile (512), the grid has 5 steps and exercises both full and
    # ragged (masked) boundary tiles.
    key = jax.random.PRNGKey(0)
    n_edges = 2500
    num_gaussians = 50
    dist = jax.random.uniform(key, (n_edges,), dtype=jnp.float32) * 5.0

    # Reference: mirrors the PyTorch forward (linspace buffer + coeff).
    offset = jnp.linspace(0.0, 5.0, num_gaussians, dtype=jnp.float32)
    delta = 5.0 / (num_gaussians - 1)
    coeff = -0.5 / (delta ** 2)
    ref = jnp.exp(coeff * (dist[:, None] - offset[None, :]) ** 2)

    # 1) Module-layout (N, G) path (spec-matching semantics).
    out = jax.block_until_ready(gaussian_smearing(dist))
    assert out.shape == (n_edges, num_gaussians)
    assert jnp.allclose(out, ref, atol=1e-5, rtol=1e-5)

    # 2) Lane-dense (G, N) variant (recommended layout for consumers that
    #    accept the transpose).
    out_t = jax.block_until_ready(gaussian_smearing_lane_dense(dist))
    assert out_t.shape == (num_gaussians, n_edges)
    assert jnp.allclose(out_t, ref.T, atol=1e-5, rtol=1e-5)

    # 3) bf16 output path (halves the dominant HBM write).
    out_bf16 = jax.block_until_ready(
        gaussian_smearing(dist, out_dtype=jnp.bfloat16))
    assert jnp.allclose(out_bf16.astype(jnp.float32), ref, atol=2e-2, rtol=2e-2)

    # 4) Fused smearing + Linear(num_gaussians -> F): the (N, 50) expansion
    #    never touches HBM.
    num_filters = 128
    kw, kb = jax.random.split(jax.random.PRNGKey(1))
    w = jax.random.normal(kw, (num_gaussians, num_filters), jnp.float32) * 0.1
    b = jax.random.normal(kb, (num_filters,), jnp.float32) * 0.1
    out_f = jax.block_until_ready(gaussian_smearing_linear(dist, w, b))
    ref_f = jnp.dot(ref, w, precision=jax.lax.Precision.HIGHEST) + b
    assert out_f.shape == (n_edges, num_filters)
    assert jnp.allclose(out_f, ref_f, atol=1e-4, rtol=1e-4)

    print("KERNEL_OK")
</pallas_src>

<mosaic_0001>
module attributes {stable_mosaic.version = 11 : i64} {
  func.func @_smearing_kernel_ng(%arg0: i32, %arg1: memref<512x1xf32, #tpu.memory_space<vmem>>, %arg2: memref<512x50xf32, #tpu.memory_space<vmem>>) attributes {dimension_semantics = [#tpu.dimension_semantics<parallel>], iteration_bounds = array<i64: 5>, scalar_prefetch = 0 : i64, scratch_operands = 0 : i64, tpu.core_type = #tpu.core_type<tc>, window_params = [{transform_indices = @transform_0, window_bounds = array<i64: 512, 1>}, {transform_indices = @transform_1, window_bounds = array<i64: 512, 50>}]} {
    %c0 = arith.constant 0 : index
    %c0_0 = arith.constant 0 : index
    %0 = vector.load %arg1[%c0, %c0_0] : memref<512x1xf32, #tpu.memory_space<vmem>>, vector<512x1xf32>
    %1 = tpu.iota {dimensions = array<i32: 1>} : vector<1x50xi32>
    %2 = arith.sitofp %1 : vector<1x50xi32> to vector<1x50xf32>
    %cst = arith.constant 0.10204082 : f32
    %3 = vector.broadcast %cst : f32 to vector<1x50xf32>
    %4 = arith.mulf %3, %2 : vector<1x50xf32>
    %cst_1 = arith.constant 0.000000e+00 : f32
    %5 = vector.broadcast %cst_1 : f32 to vector<1x50xf32>
    %6 = arith.addf %5, %4 : vector<1x50xf32>
    %7 = vector.broadcast %0 : vector<512x1xf32> to vector<512x50xf32>
    %8 = vector.broadcast %6 : vector<1x50xf32> to vector<512x50xf32>
    %9 = arith.subf %7, %8 : vector<512x50xf32>
    %cst_2 = arith.constant -4.802000e+01 : f32
    %10 = vector.broadcast %cst_2 : f32 to vector<512x50xf32>
    %11 = arith.mulf %10, %9 : vector<512x50xf32>
    %12 = arith.mulf %11, %9 : vector<512x50xf32>
    %13 = math.exp %12 : vector<512x50xf32>
    %c0_3 = arith.constant 0 : index
    %c0_4 = arith.constant 0 : index
    %14 = vector.load %arg2[%c0_3, %c0_4] : memref<512x50xf32, #tpu.memory_space<vmem>>, vector<512x50xf32>
    tpu.vector_store %arg2[%c0_3, %c0_4], %13 {strides = array<i32>} : memref<512x50xf32, #tpu.memory_space<vmem>>, vector<512x50xf32>,
    return
  }
  func.func @transform_0(%arg0: i32) -> (i32, i32) {
    %c0_i32 = arith.constant 0 : i32
    %c0_i32_0 = arith.constant 0 : i32
    return %arg0, %c0_i32 : i32, i32
  }
  func.func @transform_1(%arg0: i32) -> (i32, i32) {
    %c0_i32 = arith.constant 0 : i32
    %c0_i32_0 = arith.constant 0 : i32
    return %arg0, %c0_i32 : i32, i32
  }
}

</mosaic_0001>

<bundles_post_ra>
// kernel: tpu_custom_call.1
= control target key start
LH: loop header
LB: loop body
LE: loop exit
PB: predicated region body
PF: predicated region fallthrough
CT: control target
= control target key end

     0   :  { %s1725_s6 = smov 0   ;;  %s1727_s7 = smov 0   ;;  %s2231_s0 = inlined_call_operand.vmem [shape: f32[2500,1], index: 0, kind: input, shape index: {}]   ;;  %s2232_s1 = inlined_call_operand.vmem [shape: f32[2500,50], index: 1, kind: output, shape index: {}]  }
   0x1   :  { %s1729_s8 = smov 0  }
   0x2 LB: > { %s1738_s9 = sadd.s32 4294967295, %s1680_s8   ;;  %s1740_s10 = sadd.s32 1, %s1680_s8   ;;  %s1680_s8 = sphi %s1729_s8, %s2241_s8   ;;  %s1676_s7 = sphi %s1727_s7, %s2240_s7   ;;  %s1672_s6 = sphi %s1725_s6, %s2239_s6  }
   0x3   : > { %s41_s11 = ssub.s32 %s1680_s8, %s1740_s10  ;;  %s44_s12 = sadd.s32 1, %s1676_s7 }
   0x4   : > { %p42_p0 = scmp.eq.s32.totalorder %s41_s11, 0  ;;  %p54_p1 = scmp.ne.s32.totalorder %s1676_s7, %s1672_s6 }
   0x5   : > { %p55_p2 = scmp.eq.s32.totalorder %s1738_s9, 4  ;;  %p1383_p3 = scmp.ge.s32.totalorder %s1680_s8, 1 }
   0x6   : > { %s1748_s13 = scalar_select %p42_p0, %s1676_s7, %s44_s12  }
   0x7   : > { %p1750_p4 = por %p55_p2, %p54_p1  ;;  %p96_p5 = scmp.lt.s32.totalorder %s1680_s8, 6 }
   0x9   : > { %p97_p6 = pnand %p1383_p3, %p96_p5 }
   0xa   : > { %s1755_s15 = sshll.u32 (!%p97_p6), %s1738_s9, 6  ;;  %s116_s21 = sand.u32 (!%p97_p6), 1, %s1672_s6  }
   0xb   : > { %100 = sbr.rel (%p97_p6) target bundleno = 357 (0x165), region = 24  ;;  %p124_p7 = scmp.lt.s32.totalorder (!%p97_p6), %s1755_s15, 312 }
   0xc   : > { %s1384_s22 = sshll.u32 (!%p97_p6), %s116_s21, 9 }
   0xd   : > { %s1843_s23 = scalar_lea.vmem (!%p97_p6), [#allocation2], %s1384_s22  }
  0x10   : > { %v1714_v0 = vmov 0   ;;  %s125_s16 = scalar_select %p124_p7, %s1755_s15, 312  ;;  %v202_v57 = vlaneseq  ;;  %vm847_vm0 = vcmask 408576  }
  0x11   : > { %1497 = vset.pattern.permute.xlu1 %v1714_v0  ;;  %1496 = vset.pattern.permute.xlu0 %v1714_v0  ;;  %s920_s24 = ssub.s32 (%p1750_p4), 313, %s1755_s15  ;;  %s1404_s25 = sshll.u32 (%p1750_p4), %s1738_s9, 9 }
  0x12   : > { %s1386_s17 = sshll.u32 %s125_s16, 3  ;;  %v203_v60 = vand.u32 127, %v202_v57  ;;  %p921_p8 = scmp.lt.s32.totalorder (%p1750_p4), %s920_s24, 64 }
  0x13   : > { %s1762_s20 = scalar_lea.vmem %s2231_s0, %s1386_s17  ;;  %s2032_s28 = scalar_lea.vmem (%p1750_p4), %s2232_s1, %s1404_s25  }
  0x14   : > { %v140_v1 = vld [vmem:[%s1762_s20 + $0x10] sm:$0xff]  ;;  %v138_v2 = vld [vmem:[%s1762_s20] sm:$0xff]  ;;  %v141_v3 = vld [vmem:[%s1762_s20 + $0x18] sm:$0xff]  ;;  %v204_v63 = vcvt.s32.f32 %v203_v60 }
  0x15   : > { %219 = vperm.xlu1 %1497, %v140_v1   ;;  %209 = vperm.xlu0 %1496, %v138_v2   ;;  %v139_v4 = vld [vmem:[%s1762_s20 + $0x8] sm:$0xff]  ;;  %v142_v6 = vld [vmem:[%s1762_s20 + $0x20] sm:$0xff]  ;;  %v145_v7 = vld [vmem:[%s1762_s20 + $0x38] sm:$0xff] }
  0x16   : > { %v143_v5 = vld [vmem:[%s1762_s20 + $0x28] sm:$0xff]  ;;  %v144_v8 = vld [vmem:[%s1762_s20 + $0x30] sm:$0xff]  ;;  %v146_v10 = vld [vmem:[%s1762_s20 + $0x40] sm:$0xff]  ;;  %v1826_v2 = vmul.f32 0.10204082, %v204_v63 }
  0x17   : > { %v147_v9 = vld [vmem:[%s1762_s20 + $0x48] sm:$0xff]  ;;  %v149_v11 = vld [vmem:[%s1762_s20 + $0x58] sm:$0xff]  ;;  %v148_v12 = vld [vmem:[%s1762_s20 + $0x50] sm:$0xff] }
  0x18   : > { %v151_v13 = vld [vmem:[%s1762_s20 + $0x68] sm:$0xff]  ;;  %v150_v14 = vld [vmem:[%s1762_s20 + $0x60] sm:$0xff]  ;;  %v153_v15 = vld [vmem:[%s1762_s20 + $0x78] sm:$0xff] }
  0x19   : > { %224 = vperm.xlu1 %1497, %v141_v3   ;;  %214 = vperm.xlu0 %1496, %v139_v4   ;;  %v152_v16 = vld [vmem:[%s1762_s20 + $0x70] sm:$0xff]  ;;  %v155_v17 = vld [vmem:[%s1762_s20 + $0x88] sm:$0xff]  ;;  %v154_v18 = vld [vmem:[%s1762_s20 + $0x80] sm:$0xff] }
  0x1a   : > { %v157_v19 = vld [vmem:[%s1762_s20 + $0x98] sm:$0xff]  ;;  %v156_v20 = vld [vmem:[%s1762_s20 + $0x90] sm:$0xff]  ;;  %v159_v21 = vld [vmem:[%s1762_s20 + $0xa8] sm:$0xff] }
  0x1b   : > { %v158_v22 = vld [vmem:[%s1762_s20 + $0xa0] sm:$0xff]  ;;  %v161_v23 = vld [vmem:[%s1762_s20 + $0xb8] sm:$0xff]  ;;  %v160_v24 = vld [vmem:[%s1762_s20 + $0xb0] sm:$0xff] }
  0x1c   : > { %v163_v25 = vld [vmem:[%s1762_s20 + $0xc8] sm:$0xff]  ;;  %v162_v26 = vld [vmem:[%s1762_s20 + $0xc0] sm:$0xff]  ;;  %v165_v27 = vld [vmem:[%s1762_s20 + $0xd8] sm:$0xff] }
  0x1d   : > { %234 = vperm.xlu1 %1497, %v143_v5   ;;  %229 = vperm.xlu0 %1496, %v142_v6   ;;  %v164_v28 = vld [vmem:[%s1762_s20 + $0xd0] sm:$0xff]  ;;  %v167_v29 = vld [vmem:[%s1762_s20 + $0xe8] sm:$0xff]  ;;  %v166_v30 = vld [vmem:[%s1762_s20 + $0xe0] sm:$0xff] }
  0x1e   : > { %v169_v31 = vld [vmem:[%s1762_s20 + $0xf8] sm:$0xff]  ;;  %v168_v32 = vld [vmem:[%s1762_s20 + $0xf0] sm:$0xff]  ;;  %v171_v33 = vld [vmem:[%s1762_s20 + $0x108] sm:$0xff] }
  0x1f   : > { %v170_v34 = vld [vmem:[%s1762_s20 + $0x100] sm:$0xff]  ;;  %v173_v35 = vld [vmem:[%s1762_s20 + $0x118] sm:$0xff]  ;;  %v172_v36 = vld [vmem:[%s1762_s20 + $0x110] sm:$0xff] }
  0x20   : > { %v175_v37 = vld [vmem:[%s1762_s20 + $0x128] sm:$0xff]  ;;  %v174_v38 = vld [vmem:[%s1762_s20 + $0x120] sm:$0xff]  ;;  %v177_v39 = vld [vmem:[%s1762_s20 + $0x138] sm:$0xff] }
  0x21   : > { %244 = vperm.xlu1 %1497, %v145_v7   ;;  %239 = vperm.xlu0 %1496, %v144_v8   ;;  %v176_v40 = vld [vmem:[%s1762_s20 + $0x130] sm:$0xff]  ;;  %v179_v41 = vld [vmem:[%s1762_s20 + $0x148] sm:$0xff]  ;;  %v178_v42 = vld [vmem:[%s1762_s20 + $0x140] sm:$0xff] }
  0x22   : > { %v181_v43 = vld [vmem:[%s1762_s20 + $0x158] sm:$0xff]  ;;  %v180_v44 = vld [vmem:[%s1762_s20 + $0x150] sm:$0xff]  ;;  %v183_v45 = vld [vmem:[%s1762_s20 + $0x168] sm:$0xff] }
  0x23   : > { %v182_v46 = vld [vmem:[%s1762_s20 + $0x160] sm:$0xff]  ;;  %v185_v47 = vld [vmem:[%s1762_s20 + $0x178] sm:$0xff]  ;;  %v184_v48 = vld [vmem:[%s1762_s20 + $0x170] sm:$0xff] }
  0x24   : > { %v187_v49 = vld [vmem:[%s1762_s20 + $0x188] sm:$0xff]  ;;  %v186_v50 = vld [vmem:[%s1762_s20 + $0x180] sm:$0xff]  ;;  %v189_v51 = vld [vmem:[%s1762_s20 + $0x198] sm:$0xff] }
  0x25   : > { %254 = vperm.xlu1 %1497, %v147_v9   ;;  %249 = vperm.xlu0 %1496, %v146_v10   ;;  %v188_v52 = vld [vmem:[%s1762_s20 + $0x190] sm:$0xff]  ;;  %v191_v53 = vld [vmem:[%s1762_s20 + $0x1a8] sm:$0xff]  ;;  %v190_v54 = vld [vmem:[%s1762_s20 + $0x1a0] sm:$0xff] }
  0x26   : > { %v193_v55 = vld [vmem:[%s1762_s20 + $0x1b8] sm:$0xff]  ;;  %v192_v56 = vld [vmem:[%s1762_s20 + $0x1b0] sm:$0xff]  ;;  %v195_v58 = vld [vmem:[%s1762_s20 + $0x1c8] sm:$0xff] }
  0x27   : > { %v194_v59 = vld [vmem:[%s1762_s20 + $0x1c0] sm:$0xff]  ;;  %v197_v61 = vld [vmem:[%s1762_s20 + $0x1d8] sm:$0xff]  ;;  %v196_v62 = vld [vmem:[%s1762_s20 + $0x1d0] sm:$0xff] }
  0x28   : > { %v199_v0 = vld [vmem:[%s1762_s20 + $0x1e8] sm:$0xff]  ;;  %v198_v1 = vld [vmem:[%s1762_s20 + $0x1e0] sm:$0xff]  ;;  %v201_v3 = vld [vmem:[%s1762_s20 + $0x1f8] sm:$0xff] }
  0x29   : > { %264 = vperm.xlu1 %1497, %v149_v11   ;;  %259 = vperm.xlu0 %1496, %v148_v12   ;;  %v200_v4 = vld [vmem:[%s1762_s20 + $0x1f0] sm:$0xff] }
  0x2d   : > { %274 = vperm.xlu1 %1497, %v151_v13   ;;  %269 = vperm.xlu0 %1496, %v150_v14  }
  0x31   : > { %284 = vperm.xlu1 %1497, %v153_v15   ;;  %279 = vperm.xlu0 %1496, %v152_v16  }
  0x35   : > { %294 = vperm.xlu1 %1497, %v155_v17   ;;  %289 = vperm.xlu0 %1496, %v154_v18  }
  0x39   : > { %304 = vperm.xlu1 %1497, %v157_v19   ;;  %299 = vperm.xlu0 %1496, %v156_v20  }
  0x3d   : > { %314 = vperm.xlu1 %1497, %v159_v21   ;;  %309 = vperm.xlu0 %1496, %v158_v22  }
  0x41   : > { %324 = vperm.xlu1 %1497, %v161_v23   ;;  %319 = vperm.xlu0 %1496, %v160_v24  }
  0x45   : > { %334 = vperm.xlu1 %1497, %v163_v25   ;;  %329 = vperm.xlu0 %1496, %v162_v26  }
  0x49   : > { %344 = vperm.xlu1 %1497, %v165_v27   ;;  %339 = vperm.xlu0 %1496, %v164_v28  }
  0x4d   : > { %354 = vperm.xlu1 %1497, %v167_v29   ;;  %349 = vperm.xlu0 %1496, %v166_v30  }
  0x51   : > { %364 = vperm.xlu1 %1497, %v169_v31   ;;  %359 = vperm.xlu0 %1496, %v168_v32  }
  0x55   : > { %374 = vperm.xlu1 %1497, %v171_v33   ;;  %369 = vperm.xlu0 %1496, %v170_v34  }
  0x59   : > { %384 = vperm.xlu1 %1497, %v173_v35   ;;  %379 = vperm.xlu0 %1496, %v172_v36  }
  0x5d   : > { %394 = vperm.xlu1 %1497, %v175_v37   ;;  %389 = vperm.xlu0 %1496, %v174_v38  }
  0x61   : > { %404 = vperm.xlu1 %1497, %v177_v39   ;;  %399 = vperm.xlu0 %1496, %v176_v40  }
  0x65   : > { %414 = vperm.xlu1 %1497, %v179_v41   ;;  %409 = vperm.xlu0 %1496, %v178_v42  }
  0x69   : > { %424 = vperm.xlu1 %1497, %v181_v43   ;;  %419 = vperm.xlu0 %1496, %v180_v44  }
  0x6d   : > { %434 = vperm.xlu1 %1497, %v183_v45   ;;  %429 = vperm.xlu0 %1496, %v182_v46  }
  0x71   : > { %444 = vperm.xlu1 %1497, %v185_v47   ;;  %439 = vperm.xlu0 %1496, %v184_v48  }
  0x75   : > { %454 = vperm.xlu1 %1497, %v187_v49   ;;  %449 = vperm.xlu0 %1496, %v186_v50  }
  0x79   : > { %464 = vperm.xlu1 %1497, %v189_v51   ;;  %459 = vperm.xlu0 %1496, %v188_v52  }
  0x7d   : > { %474 = vperm.xlu1 %1497, %v191_v53   ;;  %469 = vperm.xlu0 %1496, %v190_v54  }
  0x81   : > { %484 = vperm.xlu1 %1497, %v193_v55   ;;  %479 = vperm.xlu0 %1496, %v192_v56  }
  0x85   : > { %494 = vperm.xlu1 %1497, %v195_v58   ;;  %489 = vperm.xlu0 %1496, %v194_v59  }
  0x89   : > { %504 = vperm.xlu1 %1497, %v197_v61   ;;  %499 = vperm.xlu0 %1496, %v196_v62  }
  0x8d   : > { %514 = vperm.xlu1 %1497, %v199_v0   ;;  %509 = vperm.xlu0 %1496, %v198_v1  }
  0x90   : > { %v220_v5 = vpop.permute.xlu1 %219  ;;  %v210_v6 = vpop.permute.xlu0 %209 }
  0x91   : > { %v529_v7 = vsub.f32 %v220_v5, %v1826_v2  ;;  %v527_v8 = vsub.f32 %v210_v6, %v1826_v2  ;;  %524 = vperm.xlu1 %1497, %v201_v3   ;;  %519 = vperm.xlu0 %1496, %v200_v4  }
  0x93   : > { %v593_v9 = vmul.f32 -48.02, %v529_v7  ;;  %v591_v10 = vmul.f32 -48.02, %v527_v8 }
  0x94   : > { %v225_v11 = vpop.permute.xlu1 %224  ;;  %v215_v12 = vpop.permute.xlu0 %214 }
  0x95   : > { %v657_v13 = vmul.f32 %v593_v9, %v529_v7  ;;  %v655_v14 = vmul.f32 %v591_v10, %v527_v8  ;;  %v530_v15 = vsub.f32 %v225_v11, %v1826_v2  ;;  %v528_v16 = vsub.f32 %v215_v12, %v1826_v2 }
  0x97   : > { %v723_v17 = vmul.f32 1.442695, %v657_v13  ;;  %v719_v18 = vmul.f32 1.442695, %v655_v14  ;;  %v594_v19 = vmul.f32 -48.02, %v530_v15 }
  0x98   : > { %v592_v20 = vmul.f32 -48.02, %v528_v16  ;;  %v235_v21 = vpop.permute.xlu1 %234  ;;  %v230_v22 = vpop.permute.xlu0 %229 }
  0x99   : > { %1498 = vpow2.f32 %v723_v17  ;;  %v658_v23 = vmul.f32 %v594_v19, %v530_v15  ;;  %v532_v24 = vsub.f32 %v235_v21, %v1826_v2  ;;  %v531_v25 = vsub.f32 %v230_v22, %v1826_v2 }
  0x9a   : > { %1500 = vpow2.f32 %v719_v18  ;;  %v656_v26 = vmul.f32 %v592_v20, %v528_v16 }
  0x9b   : > { %v725_v27 = vmul.f32 1.442695, %v658_v23  ;;  %v596_v28 = vmul.f32 -48.02, %v532_v24  ;;  %v595_v29 = vmul.f32 -48.02, %v531_v25 }
  0x9c   : > { %v721_v30 = vmul.f32 1.442695, %v656_v26  ;;  %v245_v31 = vpop.permute.xlu1 %244  ;;  %v240_v32 = vpop.permute.xlu0 %239 }
  0x9d   : > { %1502 = vpow2.f32 %v725_v27  ;;  %v660_v33 = vmul.f32 %v596_v28, %v532_v24  ;;  %v659_v34 = vmul.f32 %v595_v29, %v531_v25  ;;  %v534_v35 = vsub.f32 %v245_v31, %v1826_v2 }
  0x9e   : > { %1504 = vpow2.f32 %v721_v30  ;;  %v533_v36 = vsub.f32 %v240_v32, %v1826_v2 }
  0x9f   : > { %v729_v37 = vmul.f32 1.442695, %v660_v33  ;;  %v727_v38 = vmul.f32 1.442695, %v659_v34  ;;  %v598_v39 = vmul.f32 -48.02, %v534_v35 }
  0xa0   : > { %v597_v40 = vmul.f32 -48.02, %v533_v36  ;;  %v255_v41 = vpop.permute.xlu1 %254  ;;  %v250_v42 = vpop.permute.xlu0 %249 }
  0xa1   : > { %1506 = vpow2.f32 %v729_v37  ;;  %v662_v43 = vmul.f32 %v598_v39, %v534_v35  ;;  %v536_v44 = vsub.f32 %v255_v41, %v1826_v2  ;;  %v535_v45 = vsub.f32 %v250_v42, %v1826_v2 }
  0xa2   : > { %1508 = vpow2.f32 %v727_v38  ;;  %v661_v46 = vmul.f32 %v597_v40, %v533_v36 }
  0xa3   : > { %v733_v47 = vmul.f32 1.442695, %v662_v43  ;;  %v600_v48 = vmul.f32 -48.02, %v536_v44  ;;  %v599_v49 = vmul.f32 -48.02, %v535_v45 }
  0xa4   : > { %v731_v50 = vmul.f32 1.442695, %v661_v46  ;;  %v265_v51 = vpop.permute.xlu1 %264  ;;  %v260_v52 = vpop.permute.xlu0 %259 }
  0xa5   : > { %1510 = vpow2.f32 %v733_v47  ;;  %v664_v53 = vmul.f32 %v600_v48, %v536_v44  ;;  %v663_v54 = vmul.f32 %v599_v49, %v535_v45  ;;  %v538_v55 = vsub.f32 %v265_v51, %v1826_v2 }
  0xa6   : > { %v1499_v56 = vpop.eup %1498  ;;  %1512 = vpow2.f32 %v731_v50  ;;  %v537_v57 = vsub.f32 %v260_v52, %v1826_v2 }
  0xa7   : > { %v1501_v58 = vpop.eup %1500  ;;  %850 = vst.msk [vmem:[%s1843_s23 + $0x10] sm:$0xff] %vm847_vm0, %v1499_v56  ;;  %v737_v59 = vmul.f32 1.442695, %v664_v53  ;;  %v735_v60 = vmul.f32 1.442695, %v663_v54 }
  0xa8   : > { %v602_v61 = vmul.f32 -48.02, %v538_v55  ;;  %848 = vst.msk [vmem:[%s1843_s23] sm:$0xff] %vm847_vm0, %v1501_v58  ;;  %v601_v62 = vmul.f32 -48.02, %v537_v57  ;;  %v275_v63 = vpop.permute.xlu1 %274  ;;  %v270_v0 = vpop.permute.xlu0 %269 }
  0xa9   : > { %1514 = vpow2.f32 %v737_v59  ;;  %v540_v3 = vsub.f32 %v275_v63, %v1826_v2  ;;  %v539_v4 = vsub.f32 %v270_v0, %v1826_v2 }
  0xaa   : > { %v666_v1 = vmul.f32 %v602_v61, %v538_v55  ;;  %v1503_v5 = vpop.eup %1502  ;;  %1516 = vpow2.f32 %v735_v60  ;;  %v665_v6 = vmul.f32 %v601_v62, %v537_v57 }
  0xab   : > { %v1505_v7 = vpop.eup %1504  ;;  %851 = vst.msk [vmem:[%s1843_s23 + $0x18] sm:$0xff] %vm847_vm0, %v1503_v5  ;;  %v604_v9 = vmul.f32 -48.02, %v540_v3  ;;  %v603_v10 = vmul.f32 -48.02, %v539_v4 }
  0xac   : > { %v741_v8 = vmul.f32 1.442695, %v666_v1  ;;  %849 = vst.msk [vmem:[%s1843_s23 + $0x8] sm:$0xff] %vm847_vm0, %v1505_v7  ;;  %v739_v11 = vmul.f32 1.442695, %v665_v6  ;;  %v285_v12 = vpop.permute.xlu1 %284  ;;  %v280_v13 = vpop.permute.xlu0 %279 }
  0xad   : > { %v668_v14 = vmul.f32 %v604_v9, %v540_v3  ;;  %v667_v15 = vmul.f32 %v603_v10, %v539_v4  ;;  %v542_v16 = vsub.f32 %v285_v12, %v1826_v2  ;;  %v541_v18 = vsub.f32 %v280_v13, %v1826_v2 }
  0xae   : > { %1518 = vpow2.f32 %v741_v8  ;;  %v1507_v17 = vpop.eup %1506 }
  0xaf   : > { %1520 = vpow2.f32 %v739_v11  ;;  %v1509_v19 = vpop.eup %1508  ;;  %853 = vst.msk [vmem:[%s1843_s23 + $0x28] sm:$0xff] %vm847_vm0, %v1507_v17  ;;  %v745_v20 = vmul.f32 1.442695, %v668_v14  ;;  %v743_v21 = vmul.f32 1.442695, %v667_v15 }
  0xb0   : > { %v606_v22 = vmul.f32 -48.02, %v542_v16  ;;  %852 = vst.msk [vmem:[%s1843_s23 + $0x20] sm:$0xff] %vm847_vm0, %v1509_v19  ;;  %v605_v23 = vmul.f32 -48.02, %v541_v18  ;;  %v295_v24 = vpop.permute.xlu1 %294  ;;  %v290_v25 = vpop.permute.xlu0 %289 }
  0xb1   : > { %1522 = vpow2.f32 %v745_v20  ;;  %v544_v27 = vsub.f32 %v295_v24, %v1826_v2  ;;  %v543_v28 = vsub.f32 %v290_v25, %v1826_v2 }
  0xb2   : > { %v670_v26 = vmul.f32 %v606_v22, %v542_v16  ;;  %v1511_v29 = vpop.eup %1510  ;;  %1524 = vpow2.f32 %v743_v21  ;;  %v669_v30 = vmul.f32 %v605_v23, %v541_v18 }
  0xb3   : > { %v1513_v31 = vpop.eup %1512  ;;  %855 = vst.msk [vmem:[%s1843_s23 + $0x38] sm:$0xff] %vm847_vm0, %v1511_v29  ;;  %v608_v33 = vmul.f32 -48.02, %v544_v27  ;;  %v607_v34 = vmul.f32 -48.02, %v543_v28 }
  0xb4   : > { %v749_v32 = vmul.f32 1.442695, %v670_v26  ;;  %854 = vst.msk [vmem:[%s1843_s23 + $0x30] sm:$0xff] %vm847_vm0, %v1513_v31  ;;  %v747_v35 = vmul.f32 1.442695, %v669_v30  ;;  %v305_v36 = vpop.permute.xlu1 %304  ;;  %v300_v37 = vpop.permute.xlu0 %299 }
  0xb5   : > { %v672_v38 = vmul.f32 %v608_v33, %v544_v27  ;;  %v671_v39 = vmul.f32 %v607_v34, %v543_v28  ;;  %v546_v40 = vsub.f32 %v305_v36, %v1826_v2  ;;  %v545_v42 = vsub.f32 %v300_v37, %v1826_v2 }
  0xb6   : > { %1526 = vpow2.f32 %v749_v32  ;;  %v1515_v41 = vpop.eup %1514 }
  0xb7   : > { %1528 = vpow2.f32 %v747_v35  ;;  %v1517_v43 = vpop.eup %1516  ;;  %857 = vst.msk [vmem:[%s1843_s23 + $0x48] sm:$0xff] %vm847_vm0, %v1515_v41  ;;  %v753_v44 = vmul.f32 1.442695, %v672_v38  ;;  %v751_v45 = vmul.f32 1.442695, %v671_v39 }
  0xb8   : > { %v610_v46 = vmul.f32 -48.02, %v546_v40  ;;  %856 = vst.msk [vmem:[%s1843_s23 + $0x40] sm:$0xff] %vm847_vm0, %v1517_v43  ;;  %v609_v47 = vmul.f32 -48.02, %v545_v42  ;;  %v315_v48 = vpop.permute.xlu1 %314  ;;  %v310_v49 = vpop.permute.xlu0 %309 }
  0xb9   : > { %1530 = vpow2.f32 %v753_v44  ;;  %v548_v51 = vsub.f32 %v315_v48, %v1826_v2  ;;  %v547_v52 = vsub.f32 %v310_v49, %v1826_v2 }
  0xba   : > { %v674_v50 = vmul.f32 %v610_v46, %v546_v40  ;;  %1532 = vpow2.f32 %v751_v45  ;;  %v673_v54 = vmul.f32 %v609_v47, %v545_v42 }
  0xbb   : > { %v1519_v53 = vpop.eup %1518  ;;  %v612_v57 = vmul.f32 -48.02, %v548_v51  ;;  %v611_v58 = vmul.f32 -48.02, %v547_v52 }
  0xbc   : > { %v1521_v55 = vpop.eup %1520  ;;  %859 = vst.msk [vmem:[%s1843_s23 + $0x58] sm:$0xff] %vm847_vm0, %v1519_v53  ;;  %v757_v56 = vmul.f32 1.442695, %v674_v50  ;;  %v755_v59 = vmul.f32 1.442695, %v673_v54  ;;  %v325_v60 = vpop.permute.xlu1 %324 }
  0xbd   : > { %858 = vst.msk [vmem:[%s1843_s23 + $0x50] sm:$0xff] %vm847_vm0, %v1521_v55  ;;  %v320_v61 = vpop.permute.xlu0 %319  ;;  %v676_v62 = vmul.f32 %v612_v57, %v548_v51  ;;  %v675_v63 = vmul.f32 %v611_v58, %v547_v52  ;;  %v550_v0 = vsub.f32 %v325_v60, %v1826_v2 }
  0xbe   : > { %1534 = vpow2.f32 %v757_v56  ;;  %v1523_v1 = vpop.eup %1522  ;;  %v549_v3 = vsub.f32 %v320_v61, %v1826_v2 }
  0xbf   : > { %1536 = vpow2.f32 %v755_v59  ;;  %v1525_v4 = vpop.eup %1524  ;;  %861 = vst.msk [vmem:[%s1843_s23 + $0x68] sm:$0xff] %vm847_vm0, %v1523_v1  ;;  %v761_v5 = vmul.f32 1.442695, %v676_v62  ;;  %v759_v6 = vmul.f32 1.442695, %v675_v63 }
  0xc0   : > { %v614_v7 = vmul.f32 -48.02, %v550_v0  ;;  %860 = vst.msk [vmem:[%s1843_s23 + $0x60] sm:$0xff] %vm847_vm0, %v1525_v4  ;;  %v613_v8 = vmul.f32 -48.02, %v549_v3  ;;  %v335_v9 = vpop.permute.xlu1 %334 }
  0xc1   : > { %v330_v10 = vpop.permute.xlu0 %329  ;;  %1538 = vpow2.f32 %v761_v5  ;;  %v552_v12 = vsub.f32 %v335_v9, %v1826_v2 }
  0xc2   : > { %v678_v11 = vmul.f32 %v614_v7, %v550_v0  ;;  %v551_v13 = vsub.f32 %v330_v10, %v1826_v2  ;;  %1540 = vpow2.f32 %v759_v6  ;;  %v677_v15 = vmul.f32 %v613_v8, %v549_v3 }
  0xc3   : > { %v1527_v14 = vpop.eup %1526  ;;  %v616_v18 = vmul.f32 -48.02, %v552_v12 }
  0xc4   : > { %v1529_v16 = vpop.eup %1528  ;;  %863 = vst.msk [vmem:[%s1843_s23 + $0x78] sm:$0xff] %vm847_vm0, %v1527_v14  ;;  %v765_v17 = vmul.f32 1.442695, %v678_v11  ;;  %v615_v19 = vmul.f32 -48.02, %v551_v13  ;;  %v345_v21 = vpop.permute.xlu1 %344 }
  0xc5   : > { %862 = vst.msk [vmem:[%s1843_s23 + $0x70] sm:$0xff] %vm847_vm0, %v1529_v16  ;;  %v763_v20 = vmul.f32 1.442695, %v677_v15  ;;  %v340_v22 = vpop.permute.xlu0 %339  ;;  %v680_v23 = vmul.f32 %v616_v18, %v552_v12  ;;  %v554_v25 = vsub.f32 %v345_v21, %v1826_v2 }
  0xc6   : > { %1542 = vpow2.f32 %v765_v17  ;;  %v679_v24 = vmul.f32 %v615_v19, %v551_v13  ;;  %v1531_v26 = vpop.eup %1530  ;;  %v553_v27 = vsub.f32 %v340_v22, %v1826_v2 }
  0xc7   : > { %1544 = vpow2.f32 %v763_v20  ;;  %v1533_v28 = vpop.eup %1532  ;;  %865 = vst.msk [vmem:[%s1843_s23 + $0x88] sm:$0xff] %vm847_vm0, %v1531_v26  ;;  %v769_v29 = vmul.f32 1.442695, %v680_v23  ;;  %v618_v31 = vmul.f32 -48.02, %v554_v25 }
  0xc8   : > { %v767_v30 = vmul.f32 1.442695, %v679_v24  ;;  %864 = vst.msk [vmem:[%s1843_s23 + $0x80] sm:$0xff] %vm847_vm0, %v1533_v28  ;;  %v617_v32 = vmul.f32 -48.02, %v553_v27  ;;  %v355_v33 = vpop.permute.xlu1 %354 }
  0xc9   : > { %v350_v34 = vpop.permute.xlu0 %349  ;;  %1546 = vpow2.f32 %v769_v29  ;;  %v682_v35 = vmul.f32 %v618_v31, %v554_v25  ;;  %v556_v36 = vsub.f32 %v355_v33, %v1826_v2 }
  0xca   : > { %v555_v37 = vsub.f32 %v350_v34, %v1826_v2  ;;  %1548 = vpow2.f32 %v767_v30  ;;  %v681_v39 = vmul.f32 %v617_v32, %v553_v27 }
  0xcb   : > { %v1535_v38 = vpop.eup %1534  ;;  %v773_v41 = vmul.f32 1.442695, %v682_v35  ;;  %v620_v42 = vmul.f32 -48.02, %v556_v36 }
  0xcc   : > { %v1537_v40 = vpop.eup %1536  ;;  %867 = vst.msk [vmem:[%s1843_s23 + $0x98] sm:$0xff] %vm847_vm0, %v1535_v38  ;;  %v619_v43 = vmul.f32 -48.02, %v555_v37  ;;  %v771_v44 = vmul.f32 1.442695, %v681_v39  ;;  %v365_v45 = vpop.permute.xlu1 %364 }
  0xcd   : > { %866 = vst.msk [vmem:[%s1843_s23 + $0x90] sm:$0xff] %vm847_vm0, %v1537_v40  ;;  %v360_v46 = vpop.permute.xlu0 %359  ;;  %1550 = vpow2.f32 %v773_v41  ;;  %v684_v47 = vmul.f32 %v620_v42, %v556_v36  ;;  %v558_v49 = vsub.f32 %v365_v45, %v1826_v2 }
  0xce   : > { %v683_v48 = vmul.f32 %v619_v43, %v555_v37  ;;  %v1539_v50 = vpop.eup %1538  ;;  %1552 = vpow2.f32 %v771_v44  ;;  %v557_v51 = vsub.f32 %v360_v46, %v1826_v2 }
  0xcf   : > { %v1541_v52 = vpop.eup %1540  ;;  %869 = vst.msk [vmem:[%s1843_s23 + $0xa8] sm:$0xff] %vm847_vm0, %v1539_v50  ;;  %v777_v53 = vmul.f32 1.442695, %v684_v47  ;;  %v622_v55 = vmul.f32 -48.02, %v558_v49 }
  0xd0   : > { %v775_v54 = vmul.f32 1.442695, %v683_v48  ;;  %868 = vst.msk [vmem:[%s1843_s23 + $0xa0] sm:$0xff] %vm847_vm0, %v1541_v52  ;;  %v621_v56 = vmul.f32 -48.02, %v557_v51  ;;  %v375_v57 = vpop.permute.xlu1 %374 }
  0xd1   : > { %v370_v58 = vpop.permute.xlu0 %369  ;;  %1554 = vpow2.f32 %v777_v53  ;;  %v686_v59 = vmul.f32 %v622_v55, %v558_v49  ;;  %v560_v60 = vsub.f32 %v375_v57, %v1826_v2 }
  0xd2   : > { %v559_v61 = vsub.f32 %v370_v58, %v1826_v2  ;;  %1556 = vpow2.f32 %v775_v54  ;;  %v685_v63 = vmul.f32 %v621_v56, %v557_v51 }
  0xd3   : > { %v1543_v62 = vpop.eup %1542  ;;  %v781_v1 = vmul.f32 1.442695, %v686_v59  ;;  %v624_v3 = vmul.f32 -48.02, %v560_v60 }
  0xd4   : > { %v1545_v0 = vpop.eup %1544  ;;  %871 = vst.msk [vmem:[%s1843_s23 + $0xb8] sm:$0xff] %vm847_vm0, %v1543_v62  ;;  %v623_v4 = vmul.f32 -48.02, %v559_v61  ;;  %v779_v5 = vmul.f32 1.442695, %v685_v63  ;;  %v385_v6 = vpop.permute.xlu1 %384 }
  0xd5   : > { %870 = vst.msk [vmem:[%s1843_s23 + $0xb0] sm:$0xff] %vm847_vm0, %v1545_v0  ;;  %v380_v7 = vpop.permute.xlu0 %379  ;;  %1558 = vpow2.f32 %v781_v1  ;;  %v688_v8 = vmul.f32 %v624_v3, %v560_v60  ;;  %v562_v10 = vsub.f32 %v385_v6, %v1826_v2 }
  0xd6   : > { %v687_v9 = vmul.f32 %v623_v4, %v559_v61  ;;  %v1547_v11 = vpop.eup %1546  ;;  %1560 = vpow2.f32 %v779_v5  ;;  %v561_v12 = vsub.f32 %v380_v7, %v1826_v2 }
  0xd7   : > { %v1549_v13 = vpop.eup %1548  ;;  %873 = vst.msk [vmem:[%s1843_s23 + $0xc8] sm:$0xff] %vm847_vm0, %v1547_v11  ;;  %v785_v14 = vmul.f32 1.442695, %v688_v8  ;;  %v626_v16 = vmul.f32 -48.02, %v562_v10 }
  0xd8   : > { %v783_v15 = vmul.f32 1.442695, %v687_v9  ;;  %872 = vst.msk [vmem:[%s1843_s23 + $0xc0] sm:$0xff] %vm847_vm0, %v1549_v13  ;;  %v625_v17 = vmul.f32 -48.02, %v561_v12  ;;  %v395_v18 = vpop.permute.xlu1 %394 }
  0xd9   : > { %v390_v19 = vpop.permute.xlu0 %389  ;;  %1562 = vpow2.f32 %v785_v14  ;;  %v690_v20 = vmul.f32 %v626_v16, %v562_v10  ;;  %v564_v21 = vsub.f32 %v395_v18, %v1826_v2 }
  0xda   : > { %v563_v22 = vsub.f32 %v390_v19, %v1826_v2  ;;  %v1551_v23 = vpop.eup %1550  ;;  %1564 = vpow2.f32 %v783_v15  ;;  %v689_v24 = vmul.f32 %v625_v17, %v561_v12 }
  0xdb   : > { %v1553_v25 = vpop.eup %1552  ;;  %875 = vst.msk [vmem:[%s1843_s23 + $0xd8] sm:$0xff] %vm847_vm0, %v1551_v23  ;;  %v789_v26 = vmul.f32 1.442695, %v690_v20  ;;  %v628_v27 = vmul.f32 -48.02, %v564_v21 }
  0xdc   : > { %v627_v28 = vmul.f32 -48.02, %v563_v22  ;;  %874 = vst.msk [vmem:[%s1843_s23 + $0xd0] sm:$0xff] %vm847_vm0, %v1553_v25  ;;  %v787_v29 = vmul.f32 1.442695, %v689_v24  ;;  %v405_v30 = vpop.permute.xlu1 %404 }
  0xdd   : > { %v400_v31 = vpop.permute.xlu0 %399  ;;  %1566 = vpow2.f32 %v789_v26  ;;  %v692_v32 = vmul.f32 %v628_v27, %v564_v21  ;;  %v566_v34 = vsub.f32 %v405_v30, %v1826_v2 }
  0xde   : > { %v691_v33 = vmul.f32 %v627_v28, %v563_v22  ;;  %v1555_v35 = vpop.eup %1554  ;;  %1568 = vpow2.f32 %v787_v29  ;;  %v565_v36 = vsub.f32 %v400_v31, %v1826_v2 }
  0xdf   : > { %v1557_v37 = vpop.eup %1556  ;;  %877 = vst.msk [vmem:[%s1843_s23 + $0xe8] sm:$0xff] %vm847_vm0, %v1555_v35  ;;  %v793_v38 = vmul.f32 1.442695, %v692_v32  ;;  %v630_v40 = vmul.f32 -48.02, %v566_v34 }
  0xe0   : > { %v791_v39 = vmul.f32 1.442695, %v691_v33  ;;  %876 = vst.msk [vmem:[%s1843_s23 + $0xe0] sm:$0xff] %vm847_vm0, %v1557_v37  ;;  %v629_v41 = vmul.f32 -48.02, %v565_v36  ;;  %v415_v42 = vpop.permute.xlu1 %414 }
  0xe1   : > { %v410_v43 = vpop.permute.xlu0 %409  ;;  %1570 = vpow2.f32 %v793_v38  ;;  %v694_v44 = vmul.f32 %v630_v40, %v566_v34  ;;  %v568_v45 = vsub.f32 %v415_v42, %v1826_v2 }
  0xe2   : > { %v567_v46 = vsub.f32 %v410_v43, %v1826_v2  ;;  %v1559_v47 = vpop.eup %1558  ;;  %1572 = vpow2.f32 %v791_v39  ;;  %v693_v48 = vmul.f32 %v629_v41, %v565_v36 }
  0xe3   : > { %v1561_v49 = vpop.eup %1560  ;;  %879 = vst.msk [vmem:[%s1843_s23 + $0xf8] sm:$0xff] %vm847_vm0, %v1559_v47  ;;  %v797_v50 = vmul.f32 1.442695, %v694_v44  ;;  %v632_v51 = vmul.f32 -48.02, %v568_v45 }
  0xe4   : > { %v631_v52 = vmul.f32 -48.02, %v567_v46  ;;  %878 = vst.msk [vmem:[%s1843_s23 + $0xf0] sm:$0xff] %vm847_vm0, %v1561_v49  ;;  %v795_v53 = vmul.f32 1.442695, %v693_v48  ;;  %v425_v54 = vpop.permute.xlu1 %424 }
  0xe5   : > { %v420_v55 = vpop.permute.xlu0 %419  ;;  %1574 = vpow2.f32 %v797_v50  ;;  %v696_v56 = vmul.f32 %v632_v51, %v568_v45  ;;  %v570_v58 = vsub.f32 %v425_v54, %v1826_v2 }
  0xe6   : > { %v695_v57 = vmul.f32 %v631_v52, %v567_v46  ;;  %v1563_v59 = vpop.eup %1562  ;;  %1576 = vpow2.f32 %v795_v53  ;;  %v569_v60 = vsub.f32 %v420_v55, %v1826_v2 }
  0xe7   : > { %v1565_v61 = vpop.eup %1564  ;;  %881 = vst.msk [vmem:[%s1843_s23 + $0x108] sm:$0xff] %vm847_vm0, %v1563_v59  ;;  %v801_v62 = vmul.f32 1.442695, %v696_v56  ;;  %v634_v0 = vmul.f32 -48.02, %v570_v58 }
  0xe8   : > { %v799_v63 = vmul.f32 1.442695, %v695_v57  ;;  %880 = vst.msk [vmem:[%s1843_s23 + $0x100] sm:$0xff] %vm847_vm0, %v1565_v61  ;;  %v633_v1 = vmul.f32 -48.02, %v569_v60  ;;  %v435_v3 = vpop.permute.xlu1 %434 }
  0xe9   : > { %v430_v4 = vpop.permute.xlu0 %429  ;;  %1578 = vpow2.f32 %v801_v62  ;;  %v698_v5 = vmul.f32 %v634_v0, %v570_v58  ;;  %v572_v6 = vsub.f32 %v435_v3, %v1826_v2 }
  0xea   : > { %v571_v7 = vsub.f32 %v430_v4, %v1826_v2  ;;  %v1567_v8 = vpop.eup %1566  ;;  %1580 = vpow2.f32 %v799_v63  ;;  %v697_v9 = vmul.f32 %v633_v1, %v569_v60 }
  0xeb   : > { %v1569_v10 = vpop.eup %1568  ;;  %883 = vst.msk [vmem:[%s1843_s23 + $0x118] sm:$0xff] %vm847_vm0, %v1567_v8  ;;  %v805_v11 = vmul.f32 1.442695, %v698_v5  ;;  %v636_v12 = vmul.f32 -48.02, %v572_v6 }
  0xec   : > { %v635_v13 = vmul.f32 -48.02, %v571_v7  ;;  %882 = vst.msk [vmem:[%s1843_s23 + $0x110] sm:$0xff] %vm847_vm0, %v1569_v10  ;;  %v803_v14 = vmul.f32 1.442695, %v697_v9  ;;  %v445_v15 = vpop.permute.xlu1 %444 }
  0xed   : > { %v440_v16 = vpop.permute.xlu0 %439  ;;  %1582 = vpow2.f32 %v805_v11  ;;  %v700_v17 = vmul.f32 %v636_v12, %v572_v6  ;;  %v574_v19 = vsub.f32 %v445_v15, %v1826_v2 }
  0xee   : > { %v699_v18 = vmul.f32 %v635_v13, %v571_v7  ;;  %v1571_v20 = vpop.eup %1570  ;;  %1584 = vpow2.f32 %v803_v14  ;;  %v573_v21 = vsub.f32 %v440_v16, %v1826_v2 }
  0xef   : > { %v1573_v22 = vpop.eup %1572  ;;  %885 = vst.msk [vmem:[%s1843_s23 + $0x128] sm:$0xff] %vm847_vm0, %v1571_v20  ;;  %v809_v23 = vmul.f32 1.442695, %v700_v17  ;;  %v638_v25 = vmul.f32 -48.02, %v574_v19 }
  0xf0   : > { %v807_v24 = vmul.f32 1.442695, %v699_v18  ;;  %884 = vst.msk [vmem:[%s1843_s23 + $0x120] sm:$0xff] %vm847_vm0, %v1573_v22  ;;  %v637_v26 = vmul.f32 -48.02, %v573_v21  ;;  %v455_v27 = vpop.permute.xlu1 %454 }
  0xf1   : > { %v450_v28 = vpop.permute.xlu0 %449  ;;  %1586 = vpow2.f32 %v809_v23  ;;  %v702_v29 = vmul.f32 %v638_v25, %v574_v19  ;;  %v576_v30 = vsub.f32 %v455_v27, %v1826_v2 }
  0xf2   : > { %v575_v31 = vsub.f32 %v450_v28, %v1826_v2  ;;  %v1575_v32 = vpop.eup %1574  ;;  %1588 = vpow2.f32 %v807_v24  ;;  %v701_v33 = vmul.f32 %v637_v26, %v573_v21 }
  0xf3   : > { %v1577_v34 = vpop.eup %1576  ;;  %887 = vst.msk [vmem:[%s1843_s23 + $0x138] sm:$0xff] %vm847_vm0, %v1575_v32  ;;  %v813_v35 = vmul.f32 1.442695, %v702_v29  ;;  %v640_v36 = vmul.f32 -48.02, %v576_v30 }
  0xf4   : > { %v639_v37 = vmul.f32 -48.02, %v575_v31  ;;  %886 = vst.msk [vmem:[%s1843_s23 + $0x130] sm:$0xff] %vm847_vm0, %v1577_v34  ;;  %v811_v38 = vmul.f32 1.442695, %v701_v33  ;;  %v465_v39 = vpop.permute.xlu1 %464 }
  0xf5   : > { %v460_v40 = vpop.permute.xlu0 %459  ;;  %1590 = vpow2.f32 %v813_v35  ;;  %v704_v41 = vmul.f32 %v640_v36, %v576_v30  ;;  %v578_v43 = vsub.f32 %v465_v39, %v1826_v2 }
  0xf6   : > { %v703_v42 = vmul.f32 %v639_v37, %v575_v31  ;;  %v1579_v44 = vpop.eup %1578  ;;  %1592 = vpow2.f32 %v811_v38  ;;  %v577_v45 = vsub.f32 %v460_v40, %v1826_v2 }
  0xf7   : > { %v1581_v46 = vpop.eup %1580  ;;  %889 = vst.msk [vmem:[%s1843_s23 + $0x148] sm:$0xff] %vm847_vm0, %v1579_v44  ;;  %v817_v47 = vmul.f32 1.442695, %v704_v41  ;;  %v642_v49 = vmul.f32 -48.02, %v578_v43 }
  0xf8   : > { %v815_v48 = vmul.f32 1.442695, %v703_v42  ;;  %888 = vst.msk [vmem:[%s1843_s23 + $0x140] sm:$0xff] %vm847_vm0, %v1581_v46  ;;  %v641_v50 = vmul.f32 -48.02, %v577_v45  ;;  %v475_v51 = vpop.permute.xlu1 %474 }
  0xf9   : > { %v470_v52 = vpop.permute.xlu0 %469  ;;  %1594 = vpow2.f32 %v817_v47  ;;  %v706_v53 = vmul.f32 %v642_v49, %v578_v43  ;;  %v580_v54 = vsub.f32 %v475_v51, %v1826_v2 }
  0xfa   : > { %v579_v55 = vsub.f32 %v470_v52, %v1826_v2  ;;  %v1583_v56 = vpop.eup %1582  ;;  %1596 = vpow2.f32 %v815_v48  ;;  %v705_v57 = vmul.f32 %v641_v50, %v577_v45 }
  0xfb   : > { %v1585_v58 = vpop.eup %1584  ;;  %891 = vst.msk [vmem:[%s1843_s23 + $0x158] sm:$0xff] %vm847_vm0, %v1583_v56  ;;  %v821_v59 = vmul.f32 1.442695, %v706_v53  ;;  %v644_v60 = vmul.f32 -48.02, %v580_v54 }
  0xfc   : > { %v643_v61 = vmul.f32 -48.02, %v579_v55  ;;  %890 = vst.msk [vmem:[%s1843_s23 + $0x150] sm:$0xff] %vm847_vm0, %v1585_v58  ;;  %v819_v62 = vmul.f32 1.442695, %v705_v57  ;;  %v485_v63 = vpop.permute.xlu1 %484 }
  0xfd   : > { %v480_v0 = vpop.permute.xlu0 %479  ;;  %1598 = vpow2.f32 %v821_v59  ;;  %v708_v1 = vmul.f32 %v644_v60, %v580_v54  ;;  %v582_v4 = vsub.f32 %v485_v63, %v1826_v2 }
  0xfe   : > { %v707_v3 = vmul.f32 %v643_v61, %v579_v55  ;;  %v1587_v5 = vpop.eup %1586  ;;  %1600 = vpow2.f32 %v819_v62  ;;  %v581_v6 = vsub.f32 %v480_v0, %v1826_v2 }
  0xff   : > { %v1589_v7 = vpop.eup %1588  ;;  %893 = vst.msk [vmem:[%s1843_s23 + $0x168] sm:$0xff] %vm847_vm0, %v1587_v5  ;;  %v825_v8 = vmul.f32 1.442695, %v708_v1  ;;  %v646_v10 = vmul.f32 -48.02, %v582_v4 }
 0x100   : > { %v823_v9 = vmul.f32 1.442695, %v707_v3  ;;  %892 = vst.msk [vmem:[%s1843_s23 + $0x160] sm:$0xff] %vm847_vm0, %v1589_v7  ;;  %v645_v11 = vmul.f32 -48.02, %v581_v6  ;;  %v495_v12 = vpop.permute.xlu1 %494 }
 0x101   : > { %v490_v13 = vpop.permute.xlu0 %489  ;;  %1602 = vpow2.f32 %v825_v8  ;;  %v710_v14 = vmul.f32 %v646_v10, %v582_v4  ;;  %v584_v15 = vsub.f32 %v495_v12, %v1826_v2 }
 0x102   : > { %v583_v16 = vsub.f32 %v490_v13, %v1826_v2  ;;  %v1591_v17 = vpop.eup %1590  ;;  %1604 = vpow2.f32 %v823_v9  ;;  %v709_v18 = vmul.f32 %v645_v11, %v581_v6 }
 0x103   : > { %v1593_v19 = vpop.eup %1592  ;;  %895 = vst.msk [vmem:[%s1843_s23 + $0x178] sm:$0xff] %vm847_vm0, %v1591_v17  ;;  %v829_v20 = vmul.f32 1.442695, %v710_v14  ;;  %v648_v21 = vmul.f32 -48.02, %v584_v15 }
 0x104   : > { %v647_v22 = vmul.f32 -48.02, %v583_v16  ;;  %894 = vst.msk [vmem:[%s1843_s23 + $0x170] sm:$0xff] %vm847_vm0, %v1593_v19  ;;  %v827_v23 = vmul.f32 1.442695, %v709_v18  ;;  %v505_v24 = vpop.permute.xlu1 %504 }
 0x105   : > { %v500_v25 = vpop.permute.xlu0 %499  ;;  %1606 = vpow2.f32 %v829_v20  ;;  %v712_v26 = vmul.f32 %v648_v21, %v584_v15  ;;  %v586_v28 = vsub.f32 %v505_v24, %v1826_v2 }
 0x106   : > { %v711_v27 = vmul.f32 %v647_v22, %v583_v16  ;;  %v1595_v29 = vpop.eup %1594  ;;  %1608 = vpow2.f32 %v827_v23  ;;  %v585_v30 = vsub.f32 %v500_v25, %v1826_v2 }
 0x107   : > { %v1597_v31 = vpop.eup %1596  ;;  %897 = vst.msk [vmem:[%s1843_s23 + $0x188] sm:$0xff] %vm847_vm0, %v1595_v29  ;;  %v833_v32 = vmul.f32 1.442695, %v712_v26  ;;  %v650_v34 = vmul.f32 -48.02, %v586_v28 }
 0x108   : > { %v831_v33 = vmul.f32 1.442695, %v711_v27  ;;  %896 = vst.msk [vmem:[%s1843_s23 + $0x180] sm:$0xff] %vm847_vm0, %v1597_v31  ;;  %v649_v35 = vmul.f32 -48.02, %v585_v30  ;;  %v515_v36 = vpop.permute.xlu1 %514 }
 0x109   : > { %v510_v37 = vpop.permute.xlu0 %509  ;;  %1610 = vpow2.f32 %v833_v32  ;;  %v714_v38 = vmul.f32 %v650_v34, %v586_v28  ;;  %v588_v39 = vsub.f32 %v515_v36, %v1826_v2 }
 0x10a   : > { %v587_v40 = vsub.f32 %v510_v37, %v1826_v2  ;;  %v1599_v41 = vpop.eup %1598  ;;  %1612 = vpow2.f32 %v831_v33  ;;  %v713_v42 = vmul.f32 %v649_v35, %v585_v30 }
 0x10b   : > { %v1601_v43 = vpop.eup %1600  ;;  %899 = vst.msk [vmem:[%s1843_s23 + $0x198] sm:$0xff] %vm847_vm0, %v1599_v41  ;;  %v837_v44 = vmul.f32 1.442695, %v714_v38  ;;  %v652_v45 = vmul.f32 -48.02, %v588_v39 }
 0x10c   : > { %v651_v46 = vmul.f32 -48.02, %v587_v40  ;;  %898 = vst.msk [vmem:[%s1843_s23 + $0x190] sm:$0xff] %vm847_vm0, %v1601_v43  ;;  %v835_v47 = vmul.f32 1.442695, %v713_v42  ;;  %v525_v48 = vpop.permute.xlu1 %524 }
 0x10d   : > { %v520_v49 = vpop.permute.xlu0 %519  ;;  %1614 = vpow2.f32 %v837_v44  ;;  %v716_v50 = vmul.f32 %v652_v45, %v588_v39  ;;  %v590_v52 = vsub.f32 %v525_v48, %v1826_v2 }
 0x10e   : > { %v715_v51 = vmul.f32 %v651_v46, %v587_v40  ;;  %v1603_v53 = vpop.eup %1602  ;;  %1616 = vpow2.f32 %v835_v47  ;;  %v589_v54 = vsub.f32 %v520_v49, %v1826_v2 }
 0x10f   : > { %v1605_v55 = vpop.eup %1604  ;;  %901 = vst.msk [vmem:[%s1843_s23 + $0x1a8] sm:$0xff] %vm847_vm0, %v1603_v53  ;;  %v841_v56 = vmul.f32 1.442695, %v716_v50  ;;  %v654_v58 = vmul.f32 -48.02, %v590_v52 }
 0x110   : > { %v839_v57 = vmul.f32 1.442695, %v715_v51  ;;  %900 = vst.msk [vmem:[%s1843_s23 + $0x1a0] sm:$0xff] %vm847_vm0, %v1605_v55  ;;  %v653_v59 = vmul.f32 -48.02, %v589_v54 }
 0x111   : > { %1618 = vpow2.f32 %v841_v56  ;;  %v718_v60 = vmul.f32 %v654_v58, %v590_v52 }
 0x112   : > { %v1607_v61 = vpop.eup %1606  ;;  %1620 = vpow2.f32 %v839_v57  ;;  %v717_v62 = vmul.f32 %v653_v59, %v589_v54 }
 0x113   : > { %v1609_v2 = vpop.eup %1608  ;;  %903 = vst.msk [vmem:[%s1843_s23 + $0x1b8] sm:$0xff] %vm847_vm0, %v1607_v61  ;;  %v845_v63 = vmul.f32 1.442695, %v718_v60 }
 0x114   : > { %902 = vst.msk [vmem:[%s1843_s23 + $0x1b0] sm:$0xff] %vm847_vm0, %v1609_v2  ;;  %v843_v0 = vmul.f32 1.442695, %v717_v62 }
 0x115   : > { %1622 = vpow2.f32 %v845_v63 }
 0x116   : > { %v1611_v1 = vpop.eup %1610  ;;  %1624 = vpow2.f32 %v843_v0 }
 0x117   : > { %v1613_v3 = vpop.eup %1612  ;;  %905 = vst.msk [vmem:[%s1843_s23 + $0x1c8] sm:$0xff] %vm847_vm0, %v1611_v1 }
 0x118   : > { %904 = vst.msk [vmem:[%s1843_s23 + $0x1c0] sm:$0xff] %vm847_vm0, %v1613_v3 }
 0x11a   : > { %v1615_v4 = vpop.eup %1614 }
 0x11b   : > { %v1617_v5 = vpop.eup %1616  ;;  %907 = vst.msk [vmem:[%s1843_s23 + $0x1d8] sm:$0xff] %vm847_vm0, %v1615_v4 }
 0x11c   : > { %906 = vst.msk [vmem:[%s1843_s23 + $0x1d0] sm:$0xff] %vm847_vm0, %v1617_v5 }
 0x11e   : > { %v1619_v6 = vpop.eup %1618 }
 0x11f   : > { %v1621_v7 = vpop.eup %1620  ;;  %909 = vst.msk [vmem:[%s1843_s23 + $0x1e8] sm:$0xff] %vm847_vm0, %v1619_v6 }
 0x120   : > { %908 = vst.msk [vmem:[%s1843_s23 + $0x1e0] sm:$0xff] %vm847_vm0, %v1621_v7  ;;  %918 = sbr.rel (!%p1750_p4) target bundleno = 357 (0x165), region = 28 }
 0x122   : > { %v1623_v8 = vpop.eup %1622 }
 0x123   : > { %v1625_v9 = vpop.eup %1624  ;;  %911 = vst.msk [vmem:[%s1843_s23 + $0x1f8] sm:$0xff] %vm847_vm0, %v1623_v8 }
 0x124   : > { %910 = vst.msk [vmem:[%s1843_s23 + $0x1f0] sm:$0xff] %vm847_vm0, %v1625_v9 }
 0x125   : > { %s2243_s24 = smov (!%p921_p8, %s920_s24), 64 }
 0x126   : > { %s1389_s29 = sshll.u32 %s2243_s24, 7 }
 0x127   : > { %p1392_p9 = scmp.eq.s32.totalorder %s1389_s29, 0 }
 0x128   : > { %s2038_s30 = sshrl.u32 (!%p1392_p9), %s2243_s24, 6 }
 0x129   : > { %929 = sbr.rel (%p1392_p9) target bundleno = 357 (0x165), region = 32  ;;  %p1393_p10 = scmp.le.s32.totalorder (!%p1392_p9), %s2038_s30, 0 }
 0x12e   : > { %1336 = sbr.rel (%p1393_p10) target bundleno = 340 (0x154), region = 108  ;;  %s2234_s2 = smov (!%p1393_p10), %s2032_s28 }
 0x12f   : > { %s2235_s3 = smov (!%p1393_p10), %s1843_s23  ;;  %s2047_s4 = smov (!%p1393_p10), 0  }
 0x130   : > { %s2049_s5 = smov (!%p1393_p10), 0  }
 0x133 LB: >> { %v1118_v10 = vld [vmem:[%s1688_s3] sm:$0xff]  ;;  %v1120_v11 = vld [vmem:[%s1688_s3 + $0x8] sm:$0xff]  ;;  %v1122_v12 = vld [vmem:[%s1688_s3 + $0x10] sm:$0xff]  ;;  %s1246_s6 = sadd.s32 1, %s1692_s4  ;;  %s1112_s5 = sadd.s32 1, %s1696_s5   ;;  %s1696_s5 = sphi %s2049_s5, %s1112_s5   ;;  %s1692_s4 = sphi %s2047_s4, %s2238_s4   ;;  %s1688_s3 = sphi %s2235_s3, %s2237_s3   ;;  %s1684_s2 = sphi %s2234_s2, %s2236_s2  }
 0x134   : >> { %1119 = vst [vmem:[%s1684_s2] sm:$0xff] %v1118_v10  ;;  %1121 = vst [vmem:[%s1684_s2 + $0x8] sm:$0xff] %v1120_v11  ;;  %v1124_v13 = vld [vmem:[%s1688_s3 + $0x18] sm:$0xff]  ;;  %v1126_v14 = vld [vmem:[%s1688_s3 + $0x20] sm:$0xff]  ;;  %p1247_p11 = scmp.ge.s32.totalorder %s1246_s6, %s2038_s30  ;;  %p1111_p12 = scmp.ge.s32.totalorder %s1112_s5, %s2038_s30 }
 0x135   : >> { %1123 = vst [vmem:[%s1684_s2 + $0x10] sm:$0xff] %v1122_v12  ;;  %v1128_v15 = vld [vmem:[%s1688_s3 + $0x28] sm:$0xff]  ;;  %1125 = vst [vmem:[%s1684_s2 + $0x18] sm:$0xff] %v1124_v13  ;;  %v1130_v16 = vld [vmem:[%s1688_s3 + $0x30] sm:$0xff] }
 0x136   : >> { %1127 = vst [vmem:[%s1684_s2 + $0x20] sm:$0xff] %v1126_v14  ;;  %1129 = vst [vmem:[%s1684_s2 + $0x28] sm:$0xff] %v1128_v15  ;;  %v1132_v17 = vld [vmem:[%s1688_s3 + $0x38] sm:$0xff]  ;;  %v1134_v18 = vld [vmem:[%s1688_s3 + $0x40] sm:$0xff]  ;;  %s2245_s6 = smov (%p1247_p11, %s1246_s6), 0 }
 0x137   : >> { %1131 = vst [vmem:[%s1684_s2 + $0x30] sm:$0xff] %v1130_v16  ;;  %1133 = vst [vmem:[%s1684_s2 + $0x38] sm:$0xff] %v1132_v17  ;;  %v1136_v19 = vld [vmem:[%s1688_s3 + $0x48] sm:$0xff]  ;;  %v1138_v20 = vld [vmem:[%s1688_s3 + $0x50] sm:$0xff]  ;;  %s1394_s8 = sshll.u32 %s2245_s6, 9  ;;  %s2238_s4 = smov %s2245_s6 }
 0x138   : >> { %1135 = vst [vmem:[%s1684_s2 + $0x40] sm:$0xff] %v1134_v18  ;;  %v1140_v21 = vld [vmem:[%s1688_s3 + $0x58] sm:$0xff]  ;;  %1137 = vst [vmem:[%s1684_s2 + $0x48] sm:$0xff] %v1136_v19  ;;  %v1142_v22 = vld [vmem:[%s1688_s3 + $0x60] sm:$0xff]  ;;  %s2105_s9 = scalar_lea.vmem %s1843_s23, %s1394_s8 [#allocation2]   ;;  %s2108_s11 = scalar_lea.vmem %s2032_s28, %s1394_s8  }
 0x139   : >> { %1139 = vst [vmem:[%s1684_s2 + $0x50] sm:$0xff] %v1138_v20  ;;  %1141 = vst [vmem:[%s1684_s2 + $0x58] sm:$0xff] %v1140_v21  ;;  %v1144_v23 = vld [vmem:[%s1688_s3 + $0x68] sm:$0xff]  ;;  %v1146_v24 = vld [vmem:[%s1688_s3 + $0x70] sm:$0xff] }
 0x13a   : >> { %1143 = vst [vmem:[%s1684_s2 + $0x60] sm:$0xff] %v1142_v22  ;;  %1145 = vst [vmem:[%s1684_s2 + $0x68] sm:$0xff] %v1144_v23  ;;  %v1148_v25 = vld [vmem:[%s1688_s3 + $0x78] sm:$0xff]  ;;  %v1150_v26 = vld [vmem:[%s1688_s3 + $0x80] sm:$0xff] }
 0x13b   : >> { %1147 = vst [vmem:[%s1684_s2 + $0x70] sm:$0xff] %v1146_v24  ;;  %v1152_v27 = vld [vmem:[%s1688_s3 + $0x88] sm:$0xff]  ;;  %1149 = vst [vmem:[%s1684_s2 + $0x78] sm:$0xff] %v1148_v25  ;;  %v1154_v28 = vld [vmem:[%s1688_s3 + $0x90] sm:$0xff] }
 0x13c   : >> { %1151 = vst [vmem:[%s1684_s2 + $0x80] sm:$0xff] %v1150_v26  ;;  %1153 = vst [vmem:[%s1684_s2 + $0x88] sm:$0xff] %v1152_v27  ;;  %v1156_v29 = vld [vmem:[%s1688_s3 + $0x98] sm:$0xff]  ;;  %v1158_v30 = vld [vmem:[%s1688_s3 + $0xa0] sm:$0xff] }
 0x13d   : >> { %1155 = vst [vmem:[%s1684_s2 + $0x90] sm:$0xff] %v1154_v28  ;;  %1157 = vst [vmem:[%s1684_s2 + $0x98] sm:$0xff] %v1156_v29  ;;  %v1160_v31 = vld [vmem:[%s1688_s3 + $0xa8] sm:$0xff]  ;;  %v1162_v32 = vld [vmem:[%s1688_s3 + $0xb0] sm:$0xff] }
 0x13e   : >> { %1159 = vst [vmem:[%s1684_s2 + $0xa0] sm:$0xff] %v1158_v30  ;;  %v1164_v33 = vld [vmem:[%s1688_s3 + $0xb8] sm:$0xff]  ;;  %1161 = vst [vmem:[%s1684_s2 + $0xa8] sm:$0xff] %v1160_v31  ;;  %v1166_v34 = vld [vmem:[%s1688_s3 + $0xc0] sm:$0xff] }
 0x13f   : >> { %1163 = vst [vmem:[%s1684_s2 + $0xb0] sm:$0xff] %v1162_v32  ;;  %1165 = vst [vmem:[%s1684_s2 + $0xb8] sm:$0xff] %v1164_v33  ;;  %v1168_v35 = vld [vmem:[%s1688_s3 + $0xc8] sm:$0xff]  ;;  %v1170_v36 = vld [vmem:[%s1688_s3 + $0xd0] sm:$0xff] }
 0x140   : >> { %1167 = vst [vmem:[%s1684_s2 + $0xc0] sm:$0xff] %v1166_v34  ;;  %1169 = vst [vmem:[%s1684_s2 + $0xc8] sm:$0xff] %v1168_v35  ;;  %v1172_v37 = vld [vmem:[%s1688_s3 + $0xd8] sm:$0xff]  ;;  %v1174_v38 = vld [vmem:[%s1688_s3 + $0xe0] sm:$0xff] }
 0x141   : >> { %1171 = vst [vmem:[%s1684_s2 + $0xd0] sm:$0xff] %v1170_v36  ;;  %v1176_v39 = vld [vmem:[%s1688_s3 + $0xe8] sm:$0xff]  ;;  %1173 = vst [vmem:[%s1684_s2 + $0xd8] sm:$0xff] %v1172_v37  ;;  %v1178_v40 = vld [vmem:[%s1688_s3 + $0xf0] sm:$0xff] }
 0x142   : >> { %1175 = vst [vmem:[%s1684_s2 + $0xe0] sm:$0xff] %v1174_v38  ;;  %1177 = vst [vmem:[%s1684_s2 + $0xe8] sm:$0xff] %v1176_v39  ;;  %v1180_v41 = vld [vmem:[%s1688_s3 + $0xf8] sm:$0xff]  ;;  %v1182_v42 = vld [vmem:[%s1688_s3 + $0x100] sm:$0xff] }
 0x143   : >> { %1179 = vst [vmem:[%s1684_s2 + $0xf0] sm:$0xff] %v1178_v40  ;;  %1181 = vst [vmem:[%s1684_s2 + $0xf8] sm:$0xff] %v1180_v41  ;;  %v1184_v43 = vld [vmem:[%s1688_s3 + $0x108] sm:$0xff]  ;;  %v1186_v44 = vld [vmem:[%s1688_s3 + $0x110] sm:$0xff] }
 0x144   : >> { %1183 = vst [vmem:[%s1684_s2 + $0x100] sm:$0xff] %v1182_v42  ;;  %v1188_v45 = vld [vmem:[%s1688_s3 + $0x118] sm:$0xff]  ;;  %1185 = vst [vmem:[%s1684_s2 + $0x108] sm:$0xff] %v1184_v43  ;;  %v1190_v46 = vld [vmem:[%s1688_s3 + $0x120] sm:$0xff] }
 0x145   : >> { %1187 = vst [vmem:[%s1684_s2 + $0x110] sm:$0xff] %v1186_v44  ;;  %1189 = vst [vmem:[%s1684_s2 + $0x118] sm:$0xff] %v1188_v45  ;;  %v1192_v47 = vld [vmem:[%s1688_s3 + $0x128] sm:$0xff]  ;;  %v1194_v48 = vld [vmem:[%s1688_s3 + $0x130] sm:$0xff] }
 0x146   : >> { %1191 = vst [vmem:[%s1684_s2 + $0x120] sm:$0xff] %v1190_v46  ;;  %1193 = vst [vmem:[%s1684_s2 + $0x128] sm:$0xff] %v1192_v47  ;;  %v1196_v49 = vld [vmem:[%s1688_s3 + $0x138] sm:$0xff]  ;;  %v1198_v50 = vld [vmem:[%s1688_s3 + $0x140] sm:$0xff] }
 0x147   : >> { %1195 = vst [vmem:[%s1684_s2 + $0x130] sm:$0xff] %v1194_v48  ;;  %v1200_v51 = vld [vmem:[%s1688_s3 + $0x148] sm:$0xff]  ;;  %1197 = vst [vmem:[%s1684_s2 + $0x138] sm:$0xff] %v1196_v49  ;;  %v1202_v52 = vld [vmem:[%s1688_s3 + $0x150] sm:$0xff] }
 0x148   : >> { %1199 = vst [vmem:[%s1684_s2 + $0x140] sm:$0xff] %v1198_v50  ;;  %1201 = vst [vmem:[%s1684_s2 + $0x148] sm:$0xff] %v1200_v51  ;;  %v1204_v53 = vld [vmem:[%s1688_s3 + $0x158] sm:$0xff]  ;;  %v1206_v54 = vld [vmem:[%s1688_s3 + $0x160] sm:$0xff] }
 0x149   : >> { %1203 = vst [vmem:[%s1684_s2 + $0x150] sm:$0xff] %v1202_v52  ;;  %1205 = vst [vmem:[%s1684_s2 + $0x158] sm:$0xff] %v1204_v53  ;;  %v1208_v55 = vld [vmem:[%s1688_s3 + $0x168] sm:$0xff]  ;;  %v1210_v56 = vld [vmem:[%s1688_s3 + $0x170] sm:$0xff] }
 0x14a   : >> { %1207 = vst [vmem:[%s1684_s2 + $0x160] sm:$0xff] %v1206_v54  ;;  %v1212_v57 = vld [vmem:[%s1688_s3 + $0x178] sm:$0xff]  ;;  %1209 = vst [vmem:[%s1684_s2 + $0x168] sm:$0xff] %v1208_v55  ;;  %v1214_v58 = vld [vmem:[%s1688_s3 + $0x180] sm:$0xff] }
 0x14b   : >> { %1211 = vst [vmem:[%s1684_s2 + $0x170] sm:$0xff] %v1210_v56  ;;  %1213 = vst [vmem:[%s1684_s2 + $0x178] sm:$0xff] %v1212_v57  ;;  %v1216_v59 = vld [vmem:[%s1688_s3 + $0x188] sm:$0xff]  ;;  %v1218_v60 = vld [vmem:[%s1688_s3 + $0x190] sm:$0xff] }
 0x14c   : >> { %1215 = vst [vmem:[%s1684_s2 + $0x180] sm:$0xff] %v1214_v58  ;;  %1217 = vst [vmem:[%s1684_s2 + $0x188] sm:$0xff] %v1216_v59  ;;  %v1220_v61 = vld [vmem:[%s1688_s3 + $0x198] sm:$0xff]  ;;  %v1222_v62 = vld [vmem:[%s1688_s3 + $0x1a0] sm:$0xff] }
 0x14d   : >> { %1219 = vst [vmem:[%s1684_s2 + $0x190] sm:$0xff] %v1218_v60  ;;  %v1224_v2 = vld [vmem:[%s1688_s3 + $0x1a8] sm:$0xff]  ;;  %1221 = vst [vmem:[%s1684_s2 + $0x198] sm:$0xff] %v1220_v61  ;;  %v1226_v63 = vld [vmem:[%s1688_s3 + $0x1b0] sm:$0xff] }
 0x14e   : >> { %1223 = vst [vmem:[%s1684_s2 + $0x1a0] sm:$0xff] %v1222_v62  ;;  %1225 = vst [vmem:[%s1684_s2 + $0x1a8] sm:$0xff] %v1224_v2  ;;  %v1228_v0 = vld [vmem:[%s1688_s3 + $0x1b8] sm:$0xff]  ;;  %v1230_v1 = vld [vmem:[%s1688_s3 + $0x1c0] sm:$0xff] }
 0x14f   : >> { %1227 = vst [vmem:[%s1684_s2 + $0x1b0] sm:$0xff] %v1226_v63  ;;  %1229 = vst [vmem:[%s1684_s2 + $0x1b8] sm:$0xff] %v1228_v0  ;;  %v1232_v3 = vld [vmem:[%s1688_s3 + $0x1c8] sm:$0xff]  ;;  %v1234_v4 = vld [vmem:[%s1688_s3 + $0x1d0] sm:$0xff]  ;;  %1114 = sbr.rel (!%p1111_p12) target bundleno = 307 (0x133), region = 114 }
 0x150   : >> { %1231 = vst [vmem:[%s1684_s2 + $0x1c0] sm:$0xff] %v1230_v1  ;;  %v1236_v5 = vld [vmem:[%s1688_s3 + $0x1d8] sm:$0xff]  ;;  %1233 = vst [vmem:[%s1684_s2 + $0x1c8] sm:$0xff] %v1232_v3  ;;  %v1238_v6 = vld [vmem:[%s1688_s3 + $0x1e0] sm:$0xff] }
 0x151   : >> { %1235 = vst [vmem:[%s1684_s2 + $0x1d0] sm:$0xff] %v1234_v4  ;;  %1237 = vst [vmem:[%s1684_s2 + $0x1d8] sm:$0xff] %v1236_v5  ;;  %v1240_v7 = vld [vmem:[%s1688_s3 + $0x1e8] sm:$0xff]  ;;  %v1242_v8 = vld [vmem:[%s1688_s3 + $0x1f0] sm:$0xff] }
 0x152   : >> { %1239 = vst [vmem:[%s1684_s2 + $0x1e0] sm:$0xff] %v1238_v6  ;;  %1241 = vst [vmem:[%s1684_s2 + $0x1e8] sm:$0xff] %v1240_v7  ;;  %v1244_v9 = vld [vmem:[%s1688_s3 + $0x1f8] sm:$0xff]  ;;  %s2237_s3 = smov %s2105_s9 }
 0x153   : >> { %1243 = vst [vmem:[%s1684_s2 + $0x1f0] sm:$0xff] %v1242_v8  ;;  %1245 = vst [vmem:[%s1684_s2 + $0x1f8] sm:$0xff] %v1244_v9  ;;  %s2236_s2 = smov %s2108_s11 }
 0x154 PF: > { %s2213_s12 = sand.u32 63, %s2243_s24   ;;  %s1405_s14 = sshll.u32 %s2038_s30, 9 }
 0x155   : > { %s1257_s15 = scalar_lea.vmem %s1843_s23, %s1405_s14 [#allocation2]   ;;  %s1259_s16 = scalar_lea.vmem %s2032_s28, %s1405_s14  }
 0x156   : > { %p1399_p13 = scmp.le.s32.totalorder %s2213_s12, 0 }
 0x157   : > { %s1698_s17 = smov (!%p1399_p13), %s1259_s16   ;;  %s1702_s18 = smov (!%p1399_p13), %s1257_s15  }
 0x158   : > { %1350 = sbr.rel (%p1399_p13) target bundleno = 357 (0x165), region = 119  ;;  %s1706_s19 = smov (!%p1399_p13), 0  }
 0x159   : > { %s1710_s20 = smov (!%p1399_p13), 0  }
 0x15d LB: >> { %v1269_v10 = vld [vmem:[%s1704_s18] sm:$0xff]  ;;  %s1271_s21 = sadd.s32 1, %s1708_s19  ;;  %s1263_s20 = sadd.s32 1, %s1712_s20   ;;  %s1712_s20 = sphi %s1710_s20, %s1263_s20   ;;  %s1708_s19 = sphi %s1706_s19, %s1707_s19   ;;  %s1704_s18 = sphi %s1702_s18, %s1276_s18   ;;  %s1700_s17 = sphi %s1698_s17, %s1277_s17  }
 0x15e   : >> { %1270 = vst [vmem:[%s1700_s17] sm:$0xff] %v1269_v10  ;;  %p1272_p0 = scmp.ge.s32.totalorder %s1271_s21, %s2213_s12  ;;  %p1262_p1 = scmp.ge.s32.totalorder %s1263_s20, %s2213_s12 }
 0x160   : >> { %s2247_s21 = smov (%p1272_p0, %s1271_s21), 0  ;;  %1265 = sbr.rel (!%p1262_p1) target bundleno = 349 (0x15d), region = 125 }
 0x161   : >> { %s1400_s22 = sshll.u32 %s2247_s21, 3  ;;  %s1707_s19 = smov %s2247_s21  }
 0x162   : >> { %s1276_s18 = scalar_lea.vmem %s1257_s15, %s1400_s22 [#allocation2]   ;;  %s1277_s17 = scalar_lea.vmem %s1259_s16, %s1400_s22  }
 0x165 PF: > { %p8_p2 = scmp.ge.s32.totalorder %s1740_s10, 7   ;;  %s2239_s6 = smov %s1676_s7 }
 0x166   : > { %s2240_s7 = smov %s1748_s13  ;;  %s2241_s8 = smov %s1740_s10 }
 0x167   :  { %10 = sbr.rel (!%p8_p2) target bundleno = 2 (0x2), region = 136 }

</bundles_post_ra>
